<compile_context>
chip_gen: v6e
topology: v6e:2x2x1
jax: 0.10.0
libtpu: 0.0.40
codegen_flags: <defaults>
</compile_context>

<pallas_src>
import jax
import jax.numpy as jnp
from jax import lax
from jax.experimental import pallas as pl
from jax.experimental.pallas import tpu as pltpu

TILE_B = 2048                 # max batch rows per grid step (multiple of 128)
COMPUTE_DTYPE = jnp.bfloat16  # MXU fast dtype on all generations; accum stays f32
H1, H2 = 128, 256             # Critic hidden sizes


def _round_up(n, m):
    return ((n + m - 1) // m) * m


def critic_kernel(x_ref, w1_ref, b1_ref, w2_ref, b2_ref, w3_ref, b3_ref, o_ref):
    """One batch tile.  Activations are (features, tile_b): batch on the lane axis."""
    # Cast the natural-layout x tile to bf16 in VMEM (VPU; no extra HBM pass).
    x = x_ref[...].astype(COMPUTE_DTYPE)                       # (tile_b, K)
    # fc1 + ReLU: contract K (axis 1 of BOTH operands) -> (H1, tile_b); the MXU
    # handles the rhs transposition, accumulation in f32.
    h1 = lax.dot_general(w1_ref[...], x,
                         dimension_numbers=(((1,), (1,)), ((), ())),
                         preferred_element_type=jnp.float32)
    h1 = jnp.maximum(h1 + b1_ref[...], 0.0)                    # f32 epilogue (v5e-safe)
    # fc2 + ReLU: (H2, H1) @ (H1, tile_b) -> (H2, tile_b), f32 accumulation.
    h2 = jnp.dot(w2_ref[...], h1.astype(w2_ref.dtype),
                 preferred_element_type=jnp.float32)
    h2 = jnp.maximum(h2 + b2_ref[...], 0.0)
    # fc3 (value head, out_features = 1): one f32 MXU pass -> lane-dense (1, tile_b).
    v = jnp.dot(w3_ref[...], h2, preferred_element_type=jnp.float32)
    o_ref[...] = (v + b3_ref[0, 0]).astype(o_ref.dtype)


@jax.jit
def critic_forward(x, params):
    """x: (B, input_size) f32; params in PyTorch nn.Linear layout -> (B, 1) f32."""
    w1, b1, w2, b2, w3, b3 = params           # w: (out, in), b: (out,)
    B, K = x.shape
    h1 = w1.shape[0]
    h2 = w2.shape[0]

    # Tile size: multiple of 128 (lane-dense output), clamped so small batches
    # don't over-pad and so batches with >= 2 lane-tiles get >= 2 grid steps
    # (v7x has 2 TensorCores; the batch grid is marked "parallel").
    b_lanes = _round_up(max(B, 1), 128)
    tile_b = max(128, min(TILE_B, _round_up(pl.cdiv(b_lanes, 2), 128)))
    num_tiles = pl.cdiv(B, tile_b)
    b_out = num_tiles * tile_b                # rounded-up OUTPUT only (x is untouched)
    grid = (num_tiles,)

    # Only the tiny, VMEM-resident weights/biases get reshaped / cast (one-shot).
    w1c = w1.astype(COMPUTE_DTYPE)                    # (H1, K)  bf16
    w2c = w2.astype(COMPUTE_DTYPE)                    # (H2, H1) bf16
    b1c = b1.reshape(h1, 1).astype(jnp.float32)       # column, broadcasts over lanes
    b2c = b2.reshape(h2, 1).astype(jnp.float32)
    w3c = w3.reshape(1, h2).astype(jnp.float32)       # value-head row, kept f32
    b3c = b3.reshape(1, 1).astype(jnp.float32)        # scalar -> SMEM

    resident = lambda i: (0, 0)  # weights/biases: same block every step -> no re-DMA
    out = pl.pallas_call(
        critic_kernel,
        out_shape=jax.ShapeDtypeStruct((1, b_out), jnp.float32),
        grid_spec=pltpu.PrefetchScalarGridSpec(
            num_scalar_prefetch=0,
            grid=grid,
            in_specs=[
                pl.BlockSpec((tile_b, K), lambda i: (i, 0)),        # x, natural layout
                pl.BlockSpec((h1, K), resident),                    # w1
                pl.BlockSpec((h1, 1), resident),                    # b1
                pl.BlockSpec((h2, h1), resident),                   # w2
                pl.BlockSpec((h2, 1), resident),                    # b2
                pl.BlockSpec((1, h2), resident),                    # w3 (row)
                pl.BlockSpec(memory_space=pltpu.MemorySpace.SMEM),  # b3 scalar
            ],
            out_specs=pl.BlockSpec((1, tile_b), lambda i: (0, i)),  # lane-dense output
        ),
        compiler_params=pltpu.CompilerParams(
            dimension_semantics=("parallel",),   # split batch tiles across TCs (v7x)
            vmem_limit_bytes=16 * 1024 * 1024,   # ~8 MiB worst-case working set @2048
        ),
    )(x.astype(jnp.float32), w1c, b1c, w2c, b2c, w3c, b3c)

    return out[0, :B].reshape(B, 1)


def init_params(key, input_size):
    """Deterministic synthetic init, PyTorch nn.Linear layout and uniform bounds."""
    def linear(k, fan_in, fan_out):
        kw, kb = jax.random.split(k)
        bound = 1.0 / jnp.sqrt(jnp.float32(fan_in))
        w = jax.random.uniform(kw, (fan_out, fan_in), jnp.float32, -bound, bound)
        b = jax.random.uniform(kb, (fan_out,), jnp.float32, -bound, bound)
        return w, b

    k1, k2, k3 = jax.random.split(key, 3)
    w1, b1 = linear(k1, input_size, H1)
    w2, b2 = linear(k2, H1, H2)
    w3, b3 = linear(k3, H2, 1)
    return (w1, b1, w2, b2, w3, b3)


def critic_reference(x, params):
    """Pure-JAX f32 reference with PyTorch semantics: y = x @ W.T + b."""
    w1, b1, w2, b2, w3, b3 = params
    h1 = jnp.maximum(x @ w1.T + b1, 0.0)
    h2 = jnp.maximum(h1 @ w2.T + b2, 0.0)
    return h2 @ w3.T + b3


if __name__ == "__main__":
    key = jax.random.PRNGKey(0)
    k_params, k_x1, k_x2 = jax.random.split(key, 3)

    input_size = 32
    params = init_params(k_params, input_size)

    # Small demo batch (single grid step, partial x block).
    x_small = jax.random.normal(k_x1, (2, input_size), jnp.float32)
    out_small = critic_forward(x_small, params)
    jax.block_until_ready(out_small)
    ref_small = critic_reference(x_small, params)
    assert out_small.shape == (2, 1)
    # bf16 matmul compute vs f32 reference -> loosened tolerance.
    assert jnp.allclose(out_small, ref_small, atol=5e-2, rtol=5e-2), float(
        jnp.max(jnp.abs(out_small - ref_small)))

    # Larger ragged batch exercises the 2-step grid + partial last block path.
    x_big = jax.random.normal(k_x2, (1000, input_size), jnp.float32)
    out_big = critic_forward(x_big, params)
    jax.block_until_ready(out_big)
    ref_big = critic_reference(x_big, params)
    assert out_big.shape == (1000, 1)
    assert jnp.allclose(out_big, ref_big, atol=5e-2, rtol=5e-2), float(
        jnp.max(jnp.abs(out_big - ref_big)))

    print("KERNEL_OK")
</pallas_src>

<mosaic_0001>
module attributes {stable_mosaic.version = 11 : i64} {
  func.func @critic_kernel(%arg0: i32, %arg1: memref<128x32xf32, #tpu.memory_space<vmem>>, %arg2: memref<128x32xbf16, #tpu.memory_space<vmem>>, %arg3: memref<128x1xf32, #tpu.memory_space<vmem>>, %arg4: memref<256x128xbf16, #tpu.memory_space<vmem>>, %arg5: memref<256x1xf32, #tpu.memory_space<vmem>>, %arg6: memref<1x256xf32, #tpu.memory_space<vmem>>, %arg7: memref<1x1xf32, #tpu.memory_space<smem>>, %arg8: memref<1x128xf32, #tpu.memory_space<vmem>>) attributes {dimension_semantics = [#tpu.dimension_semantics<parallel>], iteration_bounds = array<i64: 1>, scalar_prefetch = 0 : i64, scratch_operands = 0 : i64, tpu.core_type = #tpu.core_type<tc>, window_params = [{transform_indices = @transform_0, window_bounds = array<i64: 128, 32>}, {pipeline_mode = #tpu.pipeline_mode<synchronous>, transform_indices = @transform_1, window_bounds = array<i64: 128, 32>}, {pipeline_mode = #tpu.pipeline_mode<synchronous>, transform_indices = @transform_2, window_bounds = array<i64: 128, 1>}, {pipeline_mode = #tpu.pipeline_mode<synchronous>, transform_indices = @transform_3, window_bounds = array<i64: 256, 128>}, {pipeline_mode = #tpu.pipeline_mode<synchronous>, transform_indices = @transform_4, window_bounds = array<i64: 256, 1>}, {pipeline_mode = #tpu.pipeline_mode<synchronous>, transform_indices = @transform_5, window_bounds = array<i64: 1, 256>}, {transform_indices = @transform_6, window_bounds = array<i64: 1, 1>}, {transform_indices = @transform_7, window_bounds = array<i64: 1, 128>}]} {
    %c0 = arith.constant 0 : index
    %c0_0 = arith.constant 0 : index
    %0 = vector.load %arg1[%c0, %c0_0] : memref<128x32xf32, #tpu.memory_space<vmem>>, vector<128x32xf32>
    %1 = arith.truncf %0 : vector<128x32xf32> to vector<128x32xbf16>
    %c0_1 = arith.constant 0 : index
    %c0_2 = arith.constant 0 : index
    %2 = vector.load %arg2[%c0_1, %c0_2] : memref<128x32xbf16, #tpu.memory_space<vmem>>, vector<128x32xbf16>
    %cst = arith.constant dense<0.000000e+00> : vector<128x128xf32>
    %3 = tpu.matmul %2, %1, %cst {dimension_numbers = #tpu.dot_dimension_numbers<[1], [1], [0], [0], [0, 0, 1, 0], [], []>} : vector<128x32xbf16>, vector<128x32xbf16>, vector<128x128xf32> -> vector<128x128xf32>
    %c0_3 = arith.constant 0 : index
    %c0_4 = arith.constant 0 : index
    %4 = vector.load %arg3[%c0_3, %c0_4] : memref<128x1xf32, #tpu.memory_space<vmem>>, vector<128x1xf32>
    %5 = vector.broadcast %4 : vector<128x1xf32> to vector<128x128xf32>
    %6 = arith.addf %3, %5 : vector<128x128xf32>
    %cst_5 = arith.constant 0.000000e+00 : f32
    %7 = vector.broadcast %cst_5 : f32 to vector<128x128xf32>
    %8 = arith.maximumf %6, %7 : vector<128x128xf32>
    %c0_6 = arith.constant 0 : index
    %c0_7 = arith.constant 0 : index
    %9 = vector.load %arg4[%c0_6, %c0_7] : memref<256x128xbf16, #tpu.memory_space<vmem>>, vector<256x128xbf16>
    %10 = arith.truncf %8 : vector<128x128xf32> to vector<128x128xbf16>
    %cst_8 = arith.constant dense<0.000000e+00> : vector<256x128xf32>
    %11 = tpu.matmul %9, %10, %cst_8 {dimension_numbers = #tpu.dot_dimension_numbers<[1], [0], [0], [1], [0, 0, 1, 1], [], []>} : vector<256x128xbf16>, vector<128x128xbf16>, vector<256x128xf32> -> vector<256x128xf32>
    %c0_9 = arith.constant 0 : index
    %c0_10 = arith.constant 0 : index
    %12 = vector.load %arg5[%c0_9, %c0_10] : memref<256x1xf32, #tpu.memory_space<vmem>>, vector<256x1xf32>
    %13 = vector.broadcast %12 : vector<256x1xf32> to vector<256x128xf32>
    %14 = arith.addf %11, %13 : vector<256x128xf32>
    %cst_11 = arith.constant 0.000000e+00 : f32
    %15 = vector.broadcast %cst_11 : f32 to vector<256x128xf32>
    %16 = arith.maximumf %14, %15 : vector<256x128xf32>
    %c0_12 = arith.constant 0 : index
    %c0_13 = arith.constant 0 : index
    %17 = vector.load %arg6[%c0_12, %c0_13] : memref<1x256xf32, #tpu.memory_space<vmem>>, vector<1x256xf32>
    %cst_14 = arith.constant dense<0.000000e+00> : vector<1x128xf32>
    %18 = tpu.matmul %17, %16, %cst_14 {dimension_numbers = #tpu.dot_dimension_numbers<[1], [0], [0], [1], [0, 0, 1, 1], [], []>} : vector<1x256xf32>, vector<256x128xf32>, vector<1x128xf32> -> vector<1x128xf32>
    %c0_15 = arith.constant 0 : index
    %c0_16 = arith.constant 0 : index
    %19 = memref.load %arg7[%c0_15, %c0_16] : memref<1x1xf32, #tpu.memory_space<smem>>
    %20 = vector.broadcast %19 : f32 to vector<1x128xf32>
    %21 = arith.addf %18, %20 : vector<1x128xf32>
    %c0_17 = arith.constant 0 : index
    %c0_18 = arith.constant 0 : index
    %22 = vector.load %arg8[%c0_17, %c0_18] : memref<1x128xf32, #tpu.memory_space<vmem>>, vector<1x128xf32>
    tpu.vector_store %arg8[%c0_17, %c0_18], %21 {strides = array<i32>} : memref<1x128xf32, #tpu.memory_space<vmem>>, vector<1x128xf32>,
    return
  }
  func.func @transform_0(%arg0: i32) -> (i32, i32) {
    %c0_i32 = arith.constant 0 : i32
    %c0_i32_0 = arith.constant 0 : i32
    return %arg0, %c0_i32 : i32, i32
  }
  func.func @transform_1(%arg0: i32) -> (i32, i32) {
    %c0_i32 = arith.constant 0 : i32
    %c0_i32_0 = arith.constant 0 : i32
    %c0_i32_1 = arith.constant 0 : i32
    return %c0_i32, %c0_i32_0 : i32, i32
  }
  func.func @transform_2(%arg0: i32) -> (i32, i32) {
    %c0_i32 = arith.constant 0 : i32
    %c0_i32_0 = arith.constant 0 : i32
    %c0_i32_1 = arith.constant 0 : i32
    return %c0_i32, %c0_i32_0 : i32, i32
  }
  func.func @transform_3(%arg0: i32) -> (i32, i32) {
    %c0_i32 = arith.constant 0 : i32
    %c0_i32_0 = arith.constant 0 : i32
    %c0_i32_1 = arith.constant 0 : i32
    return %c0_i32, %c0_i32_0 : i32, i32
  }
  func.func @transform_4(%arg0: i32) -> (i32, i32) {
    %c0_i32 = arith.constant 0 : i32
    %c0_i32_0 = arith.constant 0 : i32
    %c0_i32_1 = arith.constant 0 : i32
    return %c0_i32, %c0_i32_0 : i32, i32
  }
  func.func @transform_5(%arg0: i32) -> (i32, i32) {
    %c0_i32 = arith.constant 0 : i32
    %c0_i32_0 = arith.constant 0 : i32
    %c0_i32_1 = arith.constant 0 : i32
    return %c0_i32, %c0_i32_0 : i32, i32
  }
  func.func @transform_6(%arg0: i32) -> (i32, i32) {
    %c0_i32 = arith.constant 0 : i32
    %c0_i32_0 = arith.constant 0 : i32
    %c0_i32_1 = arith.constant 0 : i32
    return %c0_i32, %c0_i32_0 : i32, i32
  }
  func.func @transform_7(%arg0: i32) -> (i32, i32) {
    %c0_i32 = arith.constant 0 : i32
    %c0_i32_0 = arith.constant 0 : i32
    return %c0_i32, %arg0 : i32, i32
  }
}

</mosaic_0001>

<bundles_post_ra>
// kernel: critic_forward.1
= control target key start
LH: loop header
LB: loop body
LE: loop exit
PB: predicated region body
PF: predicated region fallthrough
CT: control target
= control target key end

     0   :  { %vm204_vm0 = vcmask 261120   ;;  %v1198_v3 = vmov 0   ;;  %s1605_s0 = inlined_call_operand.vmem [shape: f32[2,32], index: 0, kind: input, shape index: {}]   ;;  %s1606_s1 = inlined_call_operand.vmem [shape: bf16[128,32], index: 1, kind: input, shape index: {}]   ;;  %s1607_s2 = inlined_call_operand.vmem [shape: f32[128,1], index: 2, kind: input, shape index: {}]   ;;  %s1608_s4 = inlined_call_operand.vmem [shape: f32[256,1], index: 4, kind: input, shape index: {}]   ;;  %s1609_s3 = inlined_call_operand.vmem [shape: bf16[256,128], index: 3, kind: input, shape index: {}]   ;;  %s1610_s5 = inlined_call_operand.vmem [shape: f32[1,256], index: 5, kind: input, shape index: {}]   ;;  %s1611_s6 = inlined_call_operand.<no memory space> [shape: f32[1,1], index: 6, kind: input, shape index: {}]   ;;  %s1612_s7 = inlined_call_operand.vmem [shape: f32[1,128], index: 7, kind: output, shape index: {}]  }
   0x1   :  { %v42_v0 = vld [vmem:[%s1605_s0 + $0x70] sm:$0xff]  ;;  %v43_v1 = vld [vmem:[%s1605_s0 + $0x78] sm:$0xff]  ;;  %v40_v2 = vld [vmem:[%s1605_s0 + $0x60] sm:$0xff]  ;;  %1172 = vset.pattern.permute.xlu0 %v1198_v3  ;;  %1173 = vset.pattern.permute.xlu1 %v1198_v3 }
   0x2   :  { %v51_v4 = vpack.c.bf16 %v43_v1, %v42_v0  ;;  %v41_v5 = vld [vmem:[%s1605_s0 + $0x68] sm:$0xff]  ;;  %v38_v8 = vld [vmem:[%s1605_s0 + $0x50] sm:$0xff]  ;;  %v39_v9 = vld [vmem:[%s1605_s0 + $0x58] sm:$0xff] }
   0x3   :  { %v50_v6 = vpack.c.bf16 %v41_v5, %v40_v2  ;;  %v1174_v10 = vld [vmem:[%s1606_s1] sm:$0xff]   ;;  %v82_v11 = vld [vmem:[%s1607_s2 + $0x70] sm:$0xff]  ;;  %v49_v14 = vpack.c.bf16 %v39_v9, %v38_v8  ;;  %v83_v15 = vld [vmem:[%s1607_s2 + $0x78] sm:$0xff] }
   0x4   :  { %1163 = vmatprep.subr.msk.bf16.mxu0 %vm204_vm0, %v51_v4  ;;  %v251_v7 = vsel %vm204_vm0, %v51_v4, 0  ;;  %1099 = vmatprep.mubr.msk.bf16.mxu0 %vm204_vm0, %v1174_v10  ;;  %v80_v12 = vld [vmem:[%s1607_s2 + $0x60] sm:$0xff]  ;;  %v81_v16 = vld [vmem:[%s1607_s2 + $0x68] sm:$0xff]  ;;  %v78_v17 = vld [vmem:[%s1607_s2 + $0x50] sm:$0xff] }
   0x5   :  { %1084 = vmatpush3.bf16.xpose.msra.mxu0 %v251_v7  ;;  %156 = vperm.xlu0 %1172, %v82_v11   ;;  %v248_v13 = vsel %vm204_vm0, %v50_v6, 0  ;;  %v36_v18 = vld [vmem:[%s1605_s0 + $0x40] sm:$0xff]  ;;  %v37_v19 = vld [vmem:[%s1605_s0 + $0x48] sm:$0xff]  ;;  %v79_v20 = vld [vmem:[%s1607_s2 + $0x58] sm:$0xff]  ;;  %v245_v21 = vsel %vm204_vm0, %v49_v14, 0 }
   0x6   :  { %1164 = vmatprep.subr.msk.bf16.mxu0 %vm204_vm0, %v50_v6  ;;  %146 = vperm.xlu1 %1173, %v80_v12   ;;  %v48_v22 = vpack.c.bf16 %v37_v19, %v36_v18  ;;  %v76_v23 = vld [vmem:[%s1607_s2 + $0x40] sm:$0xff]  ;;  %v77_v24 = vld [vmem:[%s1607_s2 + $0x48] sm:$0xff]  ;;  %v74_v25 = vld [vmem:[%s1607_s2 + $0x30] sm:$0xff] }
   0x7   :  { %v34_v26 = vld [vmem:[%s1605_s0 + $0x30] sm:$0xff]  ;;  %v35_v27 = vld [vmem:[%s1605_s0 + $0x38] sm:$0xff]  ;;  %v72_v31 = vld [vmem:[%s1607_s2 + $0x20] sm:$0xff] }
   0x8   :  { %v75_v28 = vld [vmem:[%s1607_s2 + $0x38] sm:$0xff]  ;;  %v242_v29 = vsel %vm204_vm0, %v48_v22, 0  ;;  %v47_v30 = vpack.c.bf16 %v35_v27, %v34_v26  ;;  %v73_v32 = vld [vmem:[%s1607_s2 + $0x28] sm:$0xff]  ;;  %v70_v33 = vld [vmem:[%s1607_s2 + $0x10] sm:$0xff] }
   0x9   :  { %161 = vperm.xlu0 %1172, %v83_v15   ;;  %v32_v34 = vld [vmem:[%s1605_s0 + $0x20] sm:$0xff]  ;;  %v33_v35 = vld [vmem:[%s1605_s0 + $0x28] sm:$0xff]  ;;  %v71_v36 = vld [vmem:[%s1607_s2 + $0x18] sm:$0xff] }
   0xa   :  { %151 = vperm.xlu1 %1173, %v81_v16   ;;  %v239_v37 = vsel %vm204_vm0, %v47_v30, 0  ;;  %v46_v38 = vpack.c.bf16 %v33_v35, %v32_v34  ;;  %v68_v39 = vld [vmem:[%s1607_s2] sm:$0xff]  ;;  %v69_v40 = vld [vmem:[%s1607_s2 + $0x8] sm:$0xff]  ;;  %v437_v41 = vld [vmem:[%s1608_s4 + $0xf8] sm:$0xff] }
   0xb   :  { %v30_v42 = vld [vmem:[%s1605_s0 + $0x10] sm:$0xff]  ;;  %v31_v43 = vld [vmem:[%s1605_s0 + $0x18] sm:$0xff]  ;;  %v435_v49 = vld [vmem:[%s1608_s4 + $0xe8] sm:$0xff] }
   0xc   :  { %v421_v44 = vld [vmem:[%s1608_s4 + $0x78] sm:$0xff]  ;;  %v236_v45 = vsel %vm204_vm0, %v46_v38, 0  ;;  %v45_v46 = vpack.c.bf16 %v31_v43, %v30_v42  ;;  %v436_v47 = vld [vmem:[%s1608_s4 + $0xf0] sm:$0xff]  ;;  %v28_v50 = vld [vmem:[%s1605_s0] sm:$0xff] }
   0xd   :  { %1086 = vmatpush3.bf16.xpose.msra.mxu0 %v248_v13  ;;  %136 = vperm.xlu0 %1172, %v78_v17   ;;  %v420_v48 = vld [vmem:[%s1608_s4 + $0x70] sm:$0xff]  ;;  %v29_v51 = vld [vmem:[%s1605_s0 + $0x8] sm:$0xff]  ;;  %v434_v55 = vld [vmem:[%s1608_s4 + $0xe0] sm:$0xff] }
   0xe   :  { %1165 = vmatprep.subr.msk.bf16.mxu0 %vm204_vm0, %v49_v14  ;;  %141 = vperm.xlu1 %1173, %v79_v20   ;;  %v419_v52 = vld [vmem:[%s1608_s4 + $0x68] sm:$0xff]  ;;  %v233_v53 = vsel %vm204_vm0, %v45_v46, 0  ;;  %v44_v54 = vpack.c.bf16 %v29_v51, %v28_v50  ;;  %v418_v56 = vld [vmem:[%s1608_s4 + $0x60] sm:$0xff]  ;;  %v433_v57 = vld [vmem:[%s1608_s4 + $0xd8] sm:$0xff] }
   0xf   :  { %v417_v58 = vld [vmem:[%s1608_s4 + $0x58] sm:$0xff]  ;;  %v432_v60 = vld [vmem:[%s1608_s4 + $0xd0] sm:$0xff]  ;;  %v431_v62 = vld [vmem:[%s1608_s4 + $0xc8] sm:$0xff] }
  0x10   :  { %v230_v59 = vsel %vm204_vm0, %v44_v54, 0  ;;  %v416_v61 = vld [vmem:[%s1608_s4 + $0x50] sm:$0xff]  ;;  %v415_v63 = vld [vmem:[%s1608_s4 + $0x48] sm:$0xff]  ;;  %v430_v2 = vld [vmem:[%s1608_s4 + $0xc0] sm:$0xff] }
  0x11   :  { %126 = vperm.xlu0 %1172, %v76_v23   ;;  %v1175_v0 = vld [vmem:[%s1606_s1 + $0x8] sm:$0xff]   ;;  %v1176_v1 = vld [vmem:[%s1606_s1 + $0x10] sm:$0xff]   ;;  %v414_v3 = vld [vmem:[%s1608_s4 + $0x40] sm:$0xff] }
  0x12   :  { %131 = vperm.xlu1 %1173, %v77_v24   ;;  %v429_v4 = vld [vmem:[%s1608_s4 + $0xb8] sm:$0xff]  ;;  %v1178_v7 = vld [vmem:[%s1606_s1 + $0x20] sm:$0xff]   ;;  %v428_v8 = vld [vmem:[%s1608_s4 + $0xb0] sm:$0xff] }
  0x13   :  { %v413_v5 = vld [vmem:[%s1608_s4 + $0x38] sm:$0xff]  ;;  %v412_v9 = vld [vmem:[%s1608_s4 + $0x30] sm:$0xff]  ;;  %v427_v10 = vld [vmem:[%s1608_s4 + $0xa8] sm:$0xff] }
  0x14   :  { %v1177_v6 = vld [vmem:[%s1606_s1 + $0x18] sm:$0xff]   ;;  %v411_v11 = vld [vmem:[%s1608_s4 + $0x28] sm:$0xff]  ;;  %v1180_v13 = vld [vmem:[%s1606_s1 + $0x30] sm:$0xff]  }
  0x15   :  { %1088 = vmatpush3.bf16.xpose.msra.mxu0 %v245_v21  ;;  %116 = vperm.xlu0 %1172, %v74_v25   ;;  %v1179_v12 = vld [vmem:[%s1606_s1 + $0x28] sm:$0xff]   ;;  %v426_v14 = vld [vmem:[%s1608_s4 + $0xa0] sm:$0xff]  ;;  %v425_v16 = vld [vmem:[%s1608_s4 + $0x98] sm:$0xff] }
  0x16   :  { %1166 = vmatprep.subr.msk.bf16.mxu0 %vm204_vm0, %v48_v22  ;;  %121 = vperm.xlu1 %1173, %v75_v28   ;;  %v410_v15 = vld [vmem:[%s1608_s4 + $0x20] sm:$0xff]  ;;  %v409_v17 = vld [vmem:[%s1608_s4 + $0x18] sm:$0xff]  ;;  %v424_v19 = vld [vmem:[%s1608_s4 + $0x90] sm:$0xff] }
  0x17   :  { %v1181_v18 = vld [vmem:[%s1606_s1 + $0x38] sm:$0xff]   ;;  %v408_v20 = vld [vmem:[%s1608_s4 + $0x10] sm:$0xff]  ;;  %v423_v21 = vld [vmem:[%s1608_s4 + $0x88] sm:$0xff] }
  0x18   :  { %v407_v22 = vld [vmem:[%s1608_s4 + $0x8] sm:$0xff]  ;;  %v422_v23 = vld [vmem:[%s1608_s4 + $0x80] sm:$0xff] }
  0x19   :  { %106 = vperm.xlu0 %1172, %v72_v31   ;;  %v406_v24 = vld [vmem:[%s1608_s4] sm:$0xff] }
  0x1a   :  { %111 = vperm.xlu1 %1173, %v73_v32   ;;  %v1182_v25 = vld [vmem:[%s1609_s3] sm:$0xff]  }
  0x1b   :  { %1131 = vmatprep.mubr.bf16.mxu1 %v1182_v25 }
  0x1d   :  { %1090 = vmatpush3.bf16.xpose.msra.mxu0 %v242_v29  ;;  %96 = vperm.xlu0 %1172, %v70_v33  }
  0x1e   :  { %1167 = vmatprep.subr.msk.bf16.mxu0 %vm204_vm0, %v47_v30  ;;  %101 = vperm.xlu1 %1173, %v71_v36  }
  0x21   :  { %86 = vperm.xlu0 %1172, %v68_v39  }
  0x22   :  { %91 = vperm.xlu1 %1173, %v69_v40  }
  0x25   :  { %1092 = vmatpush3.bf16.xpose.msra.mxu0 %v239_v37  ;;  %595 = vperm.xlu0 %1172, %v437_v41  }
  0x26   :  { %1168 = vmatprep.subr.msk.bf16.mxu0 %vm204_vm0, %v46_v38  ;;  %515 = vperm.xlu1 %1173, %v421_v44  }
  0x29   :  { %590 = vperm.xlu0 %1172, %v436_v47  }
  0x2a   :  { %510 = vperm.xlu1 %1173, %v420_v48  }
  0x2d   :  { %1094 = vmatpush3.bf16.xpose.msra.mxu0 %v236_v45  ;;  %585 = vperm.xlu0 %1172, %v435_v49  }
  0x2e   :  { %1169 = vmatprep.subr.msk.bf16.mxu0 %vm204_vm0, %v45_v46  ;;  %505 = vperm.xlu1 %1173, %v419_v52  }
  0x31   :  { %580 = vperm.xlu0 %1172, %v434_v55  }
  0x32   :  { %500 = vperm.xlu1 %1173, %v418_v56  }
  0x35   :  { %1096 = vmatpush3.bf16.xpose.msra.mxu0 %v233_v53  ;;  %575 = vperm.xlu0 %1172, %v433_v57  }
  0x36   :  { %1170 = vmatprep.subr.msk.bf16.mxu0 %vm204_vm0, %v44_v54  ;;  %495 = vperm.xlu1 %1173, %v417_v58  }
  0x39   :  { %570 = vperm.xlu0 %1172, %v432_v60  }
  0x3a   :  { %490 = vperm.xlu1 %1173, %v416_v61  }
  0x3d   :  { %1098 = vmatpush3.bf16.xpose.msra.mxu0 %v230_v59  ;;  %565 = vperm.xlu0 %1172, %v431_v62  }
  0x3e   :  { %485 = vperm.xlu1 %1173, %v415_v63  }
  0x41   :  { %560 = vperm.xlu0 %1172, %v430_v2  }
  0x42   :  { %480 = vperm.xlu1 %1173, %v414_v3  }
  0x44   :  { %1100 = vmatmul.mubr.msk.bf16.vlgmr.msra.gmra.mxu0 %vm204_vm0, %v1175_v0 }
  0x45   :  { %1103 = vmatprep.mubr.msk.bf16.mxu0 %vm204_vm0, %v1176_v1  ;;  %555 = vperm.xlu0 %1172, %v429_v4  }
  0x46   :  { %475 = vperm.xlu1 %1173, %v413_v5  }
  0x49   :  { %550 = vperm.xlu0 %1172, %v428_v8  }
  0x4a   :  { %470 = vperm.xlu1 %1173, %v412_v9  }
  0x4c   :  { %1104 = vmatmul.mubr.msk.bf16.gmra.mxu0 %vm204_vm0, %v1177_v6 }
  0x4d   :  { %1107 = vmatprep.mubr.msk.bf16.mxu0 %vm204_vm0, %v1178_v7  ;;  %545 = vperm.xlu0 %1172, %v427_v10  }
  0x4e   :  { %465 = vperm.xlu1 %1173, %v411_v11  }
  0x51   :  { %540 = vperm.xlu0 %1172, %v426_v14  }
  0x52   :  { %460 = vperm.xlu1 %1173, %v410_v15  }
  0x54   :  { %1108 = vmatmul.mubr.msk.bf16.gmra.mxu0 %vm204_vm0, %v1179_v12 }
  0x55   :  { %1111 = vmatprep.mubr.msk.bf16.mxu0 %vm204_vm0, %v1180_v13  ;;  %535 = vperm.xlu0 %1172, %v425_v16  }
  0x56   :  { %455 = vperm.xlu1 %1173, %v409_v17  }
  0x59   :  { %530 = vperm.xlu0 %1172, %v424_v19  }
  0x5a   :  { %450 = vperm.xlu1 %1173, %v408_v20  }
  0x5c   :  { %1112 = vmatmul.mubr.msk.bf16.gmra.mxu0 %vm204_vm0, %v1181_v18 }
  0x5d   :  { %525 = vperm.xlu0 %1172, %v423_v21  }
  0x5e   :  { %445 = vperm.xlu1 %1173, %v407_v22  }
  0x61   :  { %520 = vperm.xlu0 %1172, %v422_v23  }
  0x62   :  { %440 = vperm.xlu1 %1173, %v406_v24  }
  0x80   :  { %v157_v32 = vpop.permute.xlu0 %156 }
  0x81   :  { %v147_v30 = vpop.permute.xlu1 %146 }
  0x84   :  { %v162_v37 = vpop.permute.xlu0 %161 }
  0x85   :  { %v152_v35 = vpop.permute.xlu1 %151 }
  0x88   :  { %v137_v42 = vpop.permute.xlu0 %136 }
  0x89   :  { %v142_v40 = vpop.permute.xlu1 %141 }
  0x8c   :  { %v127_v48 = vpop.permute.xlu0 %126 }
  0x8d   :  { %v132_v45 = vpop.permute.xlu1 %131 }
  0x90   :  { %v117_v62 = vpop.permute.xlu0 %116 }
  0x91   :  { %v122_v57 = vpop.permute.xlu1 %121 }
  0x94   :  { %v107_v8 = vpop.permute.xlu0 %106 }
  0x95   :  { %v112_v4 = vpop.permute.xlu1 %111 }
  0x98   :  { %v97_v17 = vpop.permute.xlu0 %96 }
  0x99   :  { %v102_v14 = vpop.permute.xlu1 %101 }
  0x9d   :  { %v92_v23 = vpop.permute.xlu1 %91 }
 0x104   :  { %v1482_v26 = vpop.f32.mrf.mxu0 }
 0x105   :  { %v296_v21 = vadd.f32 %v1482_v26, %v97_v17  ;;  %v1183_v26 = vld [vmem:[%s1609_s3 + $0x8] sm:$0xff]  }
 0x106   :  { %v1484_v27 = vpop.f32.mrf.mxu0 }
 0x108   :  { %v1102_v28 = vpop.f32.mrf.mxu0 }
 0x109   :  { %v299_v18 = vadd.f32 %v1102_v28, %v102_v14 }
 0x10a   :  { %v1486_v29 = vpop.f32.mrf.mxu0 }
 0x10b   :  { %v353_v24 = vmax.f32 %v299_v18, 0.0  ;;  %v291_v25 = vadd.f32 %v1486_v29, %v92_v23  ;;  %v1184_v29 = vld [vmem:[%s1609_s3 + $0x10] sm:$0xff]  }
 0x10c   :  { %v1105_v31 = vpop.f32.mrf.mxu0 }
 0x10d   :  { %v312_v9 = vadd.f32 %v1105_v31, %v117_v62  ;;  %v87_v31 = vpop.permute.xlu0 %86  ;;  %v351_v28 = vmax.f32 %v291_v25, 0.0 }
 0x10e   :  { %v303_v33 = vpop.f32.mrf.mxu0 }
 0x10f   :  { %v356_v15 = vmax.f32 %v312_v9, 0.0  ;;  %v304_v16 = vadd.f32 %v303_v33, %v107_v8  ;;  %v288_v33 = vadd.f32 %v1484_v27, %v87_v31  ;;  %v1185_v27 = vld [vmem:[%s1609_s3 + $0x18] sm:$0xff]  }
 0x110   :  { %v1106_v34 = vpop.f32.mrf.mxu0 }
 0x111   :  { %v315_v5 = vadd.f32 %v1106_v34, %v122_v57  ;;  %v354_v22 = vmax.f32 %v304_v16, 0.0  ;;  %v516_v57 = vpop.permute.xlu1 %515 }
 0x112   :  { %v306_v36 = vpop.f32.mrf.mxu0 }
 0x113   :  { %v357_v11 = vmax.f32 %v315_v5, 0.0  ;;  %v307_v12 = vadd.f32 %v306_v36, %v112_v4 }
 0x114   :  { %v1109_v38 = vpop.f32.mrf.mxu0 }
 0x115   :  { %v328_v58 = vadd.f32 %v1109_v38, %v137_v42  ;;  %v401_v19 = vpack.c.bf16 %v357_v11, %v356_v15  ;;  %v355_v20 = vmax.f32 %v307_v12, 0.0  ;;  %v1187_v38 = vld [vmem:[%s1609_s3 + $0x28] sm:$0xff]   ;;  %v511_v62 = vpop.permute.xlu1 %510 }
 0x116   :  { %v319_v39 = vpop.f32.mrf.mxu0  ;;  %v1191_v42 = vld [vmem:[%s1609_s3 + $0x48] sm:$0xff]  }
 0x117   :  { %v360_v2 = vmax.f32 %v328_v58, 0.0  ;;  %v320_v3 = vadd.f32 %v319_v39, %v127_v48  ;;  %v1188_v39 = vld [vmem:[%s1609_s3 + $0x30] sm:$0xff]   ;;  %v1197_v48 = vld [vmem:[%s1609_s3 + $0x78] sm:$0xff]  }
 0x118   :  { %v1110_v41 = vpop.f32.mrf.mxu0 }
 0x119   :  { %v331_v53 = vadd.f32 %v1110_v41, %v142_v40  ;;  %v358_v10 = vmax.f32 %v320_v3, 0.0  ;;  %v1189_v40 = vld [vmem:[%s1609_s3 + $0x38] sm:$0xff]   ;;  %v1190_v41 = vld [vmem:[%s1609_s3 + $0x40] sm:$0xff]   ;;  %v506_v3 = vpop.permute.xlu1 %505 }
 0x11a   :  { %v322_v43 = vpop.f32.mrf.mxu0 }
 0x11b   :  { %v361_v63 = vmax.f32 %v331_v53, 0.0  ;;  %v323_v0 = vadd.f32 %v322_v43, %v132_v45  ;;  %v1192_v43 = vld [vmem:[%s1609_s3 + $0x50] sm:$0xff]   ;;  %v1194_v45 = vld [vmem:[%s1609_s3 + $0x60] sm:$0xff]  }
 0x11c   :  { %v1113_v44 = vpop.f32.mrf.mxu0 }
 0x11d   :  { %v344_v47 = vadd.f32 %v1113_v44, %v157_v32  ;;  %v403_v6 = vpack.c.bf16 %v361_v63, %v360_v2  ;;  %v359_v7 = vmax.f32 %v323_v0, 0.0  ;;  %v352_v32 = vmax.f32 %v296_v21, 0.0  ;;  %v1193_v44 = vld [vmem:[%s1609_s3 + $0x58] sm:$0xff]   ;;  %v501_v8 = vpop.permute.xlu1 %500 }
 0x11e   :  { %v335_v46 = vpop.f32.mrf.mxu0 }
 0x11f   :  { %v336_v50 = vadd.f32 %v335_v46, %v147_v30  ;;  %v364_v54 = vmax.f32 %v344_v47, 0.0  ;;  %v402_v13 = vpack.c.bf16 %v359_v7, %v358_v10  ;;  %v400_v30 = vpack.c.bf16 %v355_v20, %v354_v22  ;;  %v1195_v46 = vld [vmem:[%s1609_s3 + $0x68] sm:$0xff]   ;;  %v1196_v47 = vld [vmem:[%s1609_s3 + $0x70] sm:$0xff]  }
 0x120   :  { %v1114_v49 = vpop.f32.mrf.mxu0  ;;  %v399_v34 = vpack.c.bf16 %v353_v24, %v352_v32 }
 0x121   :  { %v347_v51 = vadd.f32 %v1114_v49, %v162_v37  ;;  %v362_v59 = vmax.f32 %v336_v50, 0.0  ;;  %v1186_v37 = vld [vmem:[%s1609_s3 + $0x20] sm:$0xff]   ;;  %v891_v49 = vlaneseq }
 0x122   :  { %v338_v52 = vpop.f32.mrf.mxu0 }
 0x123   :  { %v365_v55 = vmax.f32 %v347_v51, 0.0  ;;  %v339_v56 = vadd.f32 %v338_v52, %v152_v35  ;;  %v350_v35 = vmax.f32 %v288_v33, 0.0  ;;  %v892_v50 = vshrl.u32 %v891_v49, 7  ;;  %v887_v52 = vld [vmem:[%s1610_s5] sm:$0x3] }
 0x125   :  { %v363_v60 = vmax.f32 %v339_v56, 0.0  ;;  %v405_v61 = vpack.c.bf16 %v365_v55, %v364_v54  ;;  %v398_v36 = vpack.c.bf16 %v351_v28, %v350_v35  ;;  %v897_v51 = vsub.s32 1, %v892_v50  ;;  %v596_v56 = vpop.permute.xlu0 %595 }
 0x126   :  { %v893_v53 = vsub.s32 0, %v892_v50 }
 0x127   :  { %v404_v1 = vpack.c.bf16 %v363_v60, %v362_v59  ;;  %1115 = vmatprep.subr.bf16.mxu1 %v405_v61  ;;  %v898_v54 = vrot.slane %v887_v52, %v897_v51 }
 0x128   :  { %1116 = vmatpush3.bf16.msra.mxu1 %v405_v61  ;;  %v1539_v55 = vrot.slane %v887_v52, %v893_v53 }
 0x129   :  { %1117 = vmatprep.subr.bf16.mxu1 %v404_v1  ;;  %965 = vmatprep.mubr.f32.mxu0 %v898_v54  ;;  %v591_v60 = vpop.permute.xlu0 %590 }
 0x12a   :  { %1613 = vst [vmem:[#allocation3_spill] sm:$0xff] %v1539_v55 }
 0x12c   :  { %1118 = vmatpush3.bf16.msra.mxu1 %v404_v1 }
 0x12d   :  { %1119 = vmatprep.subr.bf16.mxu1 %v403_v6  ;;  %v586_v1 = vpop.permute.xlu0 %585 }
 0x130   :  { %1120 = vmatpush3.bf16.msra.mxu1 %v403_v6 }
 0x131   :  { %1121 = vmatprep.subr.bf16.mxu1 %v402_v13  ;;  %v581_v6 = vpop.permute.xlu0 %580 }
 0x134   :  { %1122 = vmatpush3.bf16.msra.mxu1 %v402_v13  ;;  %v496_v13 = vpop.permute.xlu1 %495 }
 0x135   :  { %1123 = vmatprep.subr.bf16.mxu1 %v401_v19  ;;  %v576_v11 = vpop.permute.xlu0 %575 }
 0x138   :  { %1124 = vmatpush3.bf16.msra.mxu1 %v401_v19  ;;  %v491_v18 = vpop.permute.xlu1 %490 }
 0x139   :  { %1125 = vmatprep.subr.bf16.mxu1 %v400_v30  ;;  %v571_v16 = vpop.permute.xlu0 %570 }
 0x13c   :  { %1126 = vmatpush3.bf16.msra.mxu1 %v400_v30  ;;  %v486_v23 = vpop.permute.xlu1 %485 }
 0x13d   :  { %1127 = vmatprep.subr.bf16.mxu1 %v399_v34  ;;  %v566_v21 = vpop.permute.xlu0 %565 }
 0x140   :  { %1128 = vmatpush3.bf16.msra.mxu1 %v399_v34  ;;  %v481_v32 = vpop.permute.xlu1 %480 }
 0x141   :  { %1129 = vmatprep.subr.bf16.mxu1 %v398_v36  ;;  %v561_v30 = vpop.permute.xlu0 %560 }
 0x144   :  { %1130 = vmatpush3.bf16.msra.mxu1 %v398_v36  ;;  %v476_v36 = vpop.permute.xlu1 %475 }
 0x145   :  { %v556_v28 = vpop.permute.xlu0 %555 }
 0x147   :  { %1132 = vmatmul.mubr.bf16.vlgmr.msra.gmra.mxu1 %v1183_v26 }
 0x148   :  { %1135 = vmatprep.mubr.bf16.mxu1 %v1184_v29 }
 0x14f   :  { %1136 = vmatmul.mubr.bf16.gmra.mxu1 %v1185_v27  ;;  %v551_v27 = vpop.permute.xlu0 %550 }
 0x150   :  { %1139 = vmatprep.mubr.bf16.mxu1 %v1186_v37 }
 0x157   :  { %1140 = vmatmul.mubr.bf16.gmra.mxu1 %v1187_v38  ;;  %v471_v38 = vpop.permute.xlu1 %470 }
 0x158   :  { %1143 = vmatprep.mubr.bf16.mxu1 %v1188_v39 }
 0x15f   :  { %1144 = vmatmul.mubr.bf16.gmra.mxu1 %v1189_v40 }
 0x160   :  { %1147 = vmatprep.mubr.bf16.mxu1 %v1190_v41  ;;  %v546_v41 = vpop.permute.xlu0 %545 }
 0x164   :  { %v541_v52 = vpop.permute.xlu0 %540 }
 0x167   :  { %1148 = vmatmul.mubr.bf16.gmra.mxu1 %v1191_v42 }
 0x168   :  { %1151 = vmatprep.mubr.bf16.mxu1 %v1192_v43  ;;  %v1577_v43 = vpop.permute.xlu1 %465 }
 0x16c   :  { %v461_v55 = vpop.permute.xlu1 %460 }
 0x16f   :  { %1152 = vmatmul.mubr.bf16.gmra.mxu1 %v1193_v44 }
 0x170   :  { %1155 = vmatprep.mubr.bf16.mxu1 %v1194_v45 }
 0x177   :  { %1156 = vmatmul.mubr.bf16.gmra.mxu1 %v1195_v46 }
 0x178   :  { %1159 = vmatprep.mubr.bf16.mxu1 %v1196_v47 }
 0x17f   :  { %1160 = vmatmul.mubr.bf16.gmra.mxu1 %v1197_v48 }
 0x207   :  { %v1541_v58 = vpop.f32.mrf.mxu1 }
 0x208   :  { %1614 = vst [vmem:[#allocation4_spill] sm:$0xff] %v1541_v58 }
 0x209   :  { %v1543_v59 = vpop.f32.mrf.mxu1 }
 0x20a   :  { %1615 = vst [vmem:[#allocation5_spill] sm:$0xff] %v1543_v59 }
 0x20b   :  { %v1545_v61 = vpop.f32.mrf.mxu1 }
 0x20d   :  { %v1547_v63 = vpop.f32.mrf.mxu1 }
 0x20e   :  { %1616 = vst [vmem:[#allocation6_spill] sm:$0xff] %v1547_v63 }
 0x20f   :  { %v1549_v0 = vpop.f32.mrf.mxu1 }
 0x211   :  { %v1551_v2 = vpop.f32.mrf.mxu1 }
 0x213   :  { %v1553_v4 = vpop.f32.mrf.mxu1 }
 0x215   :  { %v1555_v5 = vpop.f32.mrf.mxu1 }
 0x217   :  { %v1557_v7 = vpop.f32.mrf.mxu1 }
 0x219   :  { %v1559_v9 = vpop.f32.mrf.mxu1 }
 0x21b   :  { %v1142_v10 = vpop.f32.mrf.mxu1 }
 0x21d   :  { %v1561_v12 = vpop.f32.mrf.mxu1 }
 0x21f   :  { %v1145_v14 = vpop.f32.mrf.mxu1 }
 0x220   :  { %v785_v48 = vadd.f32 %v1145_v14, %v511_v62  ;;  %v769_v14 = vadd.f32 %v1557_v7, %v491_v18  ;;  %v756_v18 = vadd.f32 %v1553_v4, %v476_v36  ;;  %v745_v36 = vadd.f32 %v1551_v2, %v461_v55 }
 0x221   :  { %v776_v15 = vpop.f32.mrf.mxu1 }
 0x222   :  { %v869_v63 = vmax.f32 %v785_v48, 0.0 }
 0x223   :  { %v1146_v17 = vpop.f32.mrf.mxu1 }
 0x224   :  { %v788_v44 = vadd.f32 %v1146_v17, %v516_v57  ;;  %v772_v57 = vadd.f32 %v1142_v10, %v496_v13  ;;  %v456_v17 = vpop.permute.xlu1 %455  ;;  %v761_v13 = vadd.f32 %v1559_v9, %v481_v32  ;;  %v748_v32 = vadd.f32 %v1555_v5, %v1577_v43  ;;  %v1623_v43 = vld [vmem:[#allocation6_spill] sm:$0xff] }
 0x225   :  { %v779_v19 = vpop.f32.mrf.mxu1 }
 0x226   :  { %v870_v53 = vmax.f32 %v788_v44, 0.0  ;;  %v780_v54 = vadd.f32 %v779_v19, %v506_v3 }
 0x227   :  { %v1563_v20 = vpop.f32.mrf.mxu1 }
 0x228   :  { %1617 = vst [vmem:[#allocation7_spill] sm:$0xff] %v1563_v20 }
 0x229   :  { %v1565_v22 = vpop.f32.mrf.mxu1 }
 0x22a   :  { %1618 = vst [vmem:[#allocation8_spill] sm:$0xff] %v1565_v22 }
 0x22b   :  { %v1567_v24 = vpop.f32.mrf.mxu1 }
 0x22d   :  { %v1569_v25 = vpop.f32.mrf.mxu1 }
 0x22e   :  { %1619 = vst [vmem:[#allocation9_spill] sm:$0xff] %v1569_v25  ;;  %v777_v25 = vadd.f32 %v776_v15, %v501_v8  ;;  %v866_v8 = vmax.f32 %v772_v57, 0.0  ;;  %v1626_v57 = vld [vmem:[#allocation3_spill] sm:$0xff] }
 0x22f   :  { %v1571_v31 = vpop.f32.mrf.mxu1  ;;  %v1620_v5 = vld [vmem:[#allocation7_spill] sm:$0xff] }
 0x230   :  { %v867_v3 = vmax.f32 %v777_v25, 0.0 }
 0x231   :  { %v1573_v33 = vpop.f32.mrf.mxu1 }
 0x233   :  { %v1154_v34 = vpop.f32.mrf.mxu1 }
 0x234   :  { %v820_v15 = vadd.f32 %v1154_v34, %v556_v28  ;;  %v809_v34 = vadd.f32 %v1573_v33, %v541_v52  ;;  %v1621_v33 = vld [vmem:[#allocation4_spill] sm:$0xff] }
 0x235   :  { %v1575_v35 = vpop.f32.mrf.mxu1  ;;  %v1622_v55 = vld [vmem:[#allocation9_spill] sm:$0xff] }
 0x236   :  { %v878_v25 = vmax.f32 %v820_v15, 0.0  ;;  %v812_v9 = vadd.f32 %v1575_v35, %v546_v41  ;;  %v740_v35 = vadd.f32 %v1545_v61, %v456_v17 }
 0x237   :  { %v1157_v26 = vpop.f32.mrf.mxu1 }
 0x239   :  { %v824_v29 = vpop.f32.mrf.mxu1 }
 0x23a   :  { %v825_v10 = vadd.f32 %v824_v29, %v561_v30  ;;  %v862_v30 = vmax.f32 %v756_v18, 0.0  ;;  %v876_v29 = vmax.f32 %v812_v9, 0.0 }
 0x23b   :  { %v1158_v37 = vpop.f32.mrf.mxu1 }
 0x23c   :  { %v836_v58 = vadd.f32 %v1158_v37, %v576_v11  ;;  %v764_v11 = vadd.f32 %v1561_v12, %v486_v23  ;;  %v879_v12 = vmax.f32 %v825_v10, 0.0  ;;  %v863_v23 = vmax.f32 %v761_v13, 0.0 }
 0x23d   :  { %v827_v39 = vpop.f32.mrf.mxu1 }
 0x23e   :  { %v828_v19 = vadd.f32 %v827_v39, %v566_v21  ;;  %v817_v21 = vadd.f32 %v1571_v31, %v551_v27  ;;  %v860_v27 = vmax.f32 %v748_v32, 0.0 }
 0x23f   :  { %v1161_v40 = vpop.f32.mrf.mxu1 }
 0x240   :  { %v849_v46 = vadd.f32 %v1161_v40, %v591_v60  ;;  %v868_v60 = vmax.f32 %v780_v54, 0.0  ;;  %v877_v4 = vmax.f32 %v817_v21, 0.0  ;;  %v859_v40 = vmax.f32 %v745_v36, 0.0 }
 0x241   :  { %v840_v42 = vpop.f32.mrf.mxu1 }
 0x242   :  { %v885_v59 = vmax.f32 %v849_v46, 0.0  ;;  %v841_v22 = vadd.f32 %v840_v42, %v581_v6  ;;  %v882_v6 = vmax.f32 %v836_v58, 0.0  ;;  %v864_v58 = vmax.f32 %v764_v11, 0.0  ;;  %v1624_v46 = vld [vmem:[#allocation8_spill] sm:$0xff] }
 0x243   :  { %v1162_v45 = vpop.f32.mrf.mxu1 }
 0x244   :  { %v852_v47 = vadd.f32 %v1162_v45, %v596_v56  ;;  %v833_v56 = vadd.f32 %v1157_v26, %v571_v16  ;;  %v883_v62 = vmax.f32 %v841_v22, 0.0  ;;  %v880_v16 = vmax.f32 %v828_v19, 0.0 }
 0x245   :  { %v843_v49 = vpop.f32.mrf.mxu1  ;;  %v753_v22 = vadd.f32 %v1549_v0, %v471_v38  ;;  %v875_v38 = vmax.f32 %v809_v34, 0.0 }
 0x246   :  { %v886_v50 = vmax.f32 %v852_v47, 0.0  ;;  %v844_v51 = vadd.f32 %v843_v49, %v586_v1  ;;  %v536_v1 = vpop.permute.xlu0 %535  ;;  %v1625_v49 = vld [vmem:[#allocation5_spill] sm:$0xff] }
 0x247   :  { %v861_v28 = vmax.f32 %v753_v22, 0.0  ;;  %v804_v26 = vadd.f32 %v1567_v24, %v536_v1  ;;  %v858_v24 = vmax.f32 %v740_v35, 0.0 }
 0x248   :  { %1048 = vmatprep.subr.mxu0 %v886_v50  ;;  %v884_v20 = vmax.f32 %v844_v51, 0.0 }
 0x249   :  { %1049 = vmatpush3.msra.mxu0 %v870_v53  ;;  %v874_v41 = vmax.f32 %v804_v26, 0.0 }
 0x24a   :  { %1050 = vmatprep.subr.mxu0 %v885_v59  ;;  %v881_v59 = vmax.f32 %v833_v56, 0.0  ;;  %v531_v7 = vpop.permute.xlu0 %530  ;;  %v889_v56 = vstv %s1611_s6 }
 0x24b   :  { %1051 = vmatpush3.msra.mxu0 %v869_v63  ;;  %v865_v63 = vmax.f32 %v769_v14, 0.0  ;;  %v801_v37 = vadd.f32 %v1620_v5, %v531_v7 }
 0x24c   :  { %1052 = vmatprep.subr.mxu0 %v884_v20  ;;  %v451_v20 = vpop.permute.xlu1 %450 }
 0x24d   :  { %1053 = vmatpush3.msra.mxu0 %v868_v60  ;;  %v737_v39 = vadd.f32 %v1621_v33, %v451_v20  ;;  %v873_v45 = vmax.f32 %v801_v37, 0.0 }
 0x24e   :  { %1054 = vmatprep.subr.mxu0 %v883_v62  ;;  %v526_v31 = vpop.permute.xlu0 %525 }
 0x24f   :  { %1055 = vmatpush3.msra.mxu0 %v867_v3  ;;  %v796_v2 = vadd.f32 %v1622_v55, %v526_v31  ;;  %v857_v48 = vmax.f32 %v737_v39, 0.0 }
 0x250   :  { %1056 = vmatprep.subr.mxu0 %v882_v6  ;;  %v446_v0 = vpop.permute.xlu1 %445 }
 0x251   :  { %1057 = vmatpush3.msra.mxu0 %v866_v8  ;;  %v732_v44 = vadd.f32 %v1623_v43, %v446_v0  ;;  %v872_v51 = vmax.f32 %v796_v2, 0.0 }
 0x252   :  { %1058 = vmatprep.subr.mxu0 %v881_v59  ;;  %v521_v42 = vpop.permute.xlu0 %520 }
 0x253   :  { %1059 = vmatpush3.msra.mxu0 %v865_v63  ;;  %v793_v47 = vadd.f32 %v1624_v46, %v521_v42  ;;  %v856_v52 = vmax.f32 %v732_v44, 0.0 }
 0x254   :  { %1060 = vmatprep.subr.mxu0 %v880_v16  ;;  %v441_v61 = vpop.permute.xlu1 %440 }
 0x255   :  { %1061 = vmatpush3.msra.mxu0 %v864_v58  ;;  %v729_v50 = vadd.f32 %v1625_v49, %v441_v61  ;;  %v871_v53 = vmax.f32 %v793_v47, 0.0 }
 0x256   :  { %1062 = vmatprep.subr.mxu0 %v879_v12 }
 0x257   :  { %1063 = vmatpush3.msra.mxu0 %v863_v23  ;;  %v855_v54 = vmax.f32 %v729_v50, 0.0 }
 0x258   :  { %1064 = vmatprep.subr.mxu0 %v878_v25 }
 0x259   :  { %1065 = vmatpush3.msra.mxu0 %v862_v30 }
 0x25a   :  { %1066 = vmatprep.subr.mxu0 %v877_v4 }
 0x25b   :  { %1067 = vmatpush3.msra.mxu0 %v861_v28 }
 0x25c   :  { %1068 = vmatprep.subr.mxu0 %v876_v29 }
 0x25d   :  { %1069 = vmatpush3.msra.mxu0 %v860_v27 }
 0x25e   :  { %1070 = vmatprep.subr.mxu0 %v875_v38 }
 0x25f   :  { %1071 = vmatpush3.msra.mxu0 %v859_v40 }
 0x260   :  { %1072 = vmatprep.subr.mxu0 %v874_v41 }
 0x261   :  { %1073 = vmatpush3.msra.mxu0 %v858_v24 }
 0x262   :  { %1074 = vmatprep.subr.mxu0 %v873_v45 }
 0x263   :  { %1075 = vmatpush3.msra.mxu0 %v857_v48 }
 0x264   :  { %1076 = vmatprep.subr.mxu0 %v872_v51 }
 0x265   :  { %1077 = vmatpush3.msra.mxu0 %v856_v52 }
 0x266   :  { %1078 = vmatprep.subr.mxu0 %v871_v53 }
 0x267   :  { %1079 = vmatpush3.msra.mxu0 %v855_v54 }
 0x268   :  { %966 = vmatmul.mubr.f32.vlgmr.msra.gmra.mxu0 %v1626_v57 }
 0x328   :  { %v1080_v60 = vpop.f32.mrf.mxu0 }
 0x32a   :  { %v1081_v62 = vpop.f32.mrf.mxu0 }
 0x32b   :  { %v1082_v1 = vadd.f32 %v1081_v62, %v1080_v60 }
 0x32d   :  { %v968_v14 = vadd.f32 %v1082_v1, %v889_v56 }
 0x32f   :  { %971 = vst [vmem:[%s1612_s7] sm:$0x1] %v968_v14 }

</bundles_post_ra>
